<compile_context>
chip_gen: v5e
topology: v5e:2x2
jax: 0.10.0
libtpu: 0.0.40
codegen_flags: <defaults>
</compile_context>

<pallas_src>
import functools

import jax
import jax.numpy as jnp
from jax.experimental import pallas as pl
from jax.experimental.pallas import tpu as pltpu


def _ls_ce_kernel(x_ref, t_ref, out_ref, *, ignore_index, n_rows):
    """One row-tile: emit [sum_i smooth_i, sum_i nll_i, #valid, 0, ...] (1, 128)."""
    i = pl.program_id(0)
    x = x_ref[...].astype(jnp.float32)          # (TILE_N, C) logits
    t = t_ref[...]                              # (TILE_N, 1) int32 targets
    tn, c = x.shape

    # Mask rows that fall past the true N (remainder tile reads padding).
    row = jax.lax.broadcasted_iota(jnp.int32, (tn, 1), 0) + i * tn
    row_ok = row < n_rows                                            # (TILE_N, 1)

    # --- numerically stable log-softmax pieces (per row) ---
    m = jnp.max(x, axis=-1, keepdims=True)                           # (TILE_N, 1)
    lse = m + jnp.log(jnp.sum(jnp.exp(x - m), axis=-1, keepdims=True))
    sum_x = jnp.sum(x, axis=-1, keepdims=True)

    # --- smoothing term: -sum_c log_preds[i, c] = C*lse_i - sum_c x[i, c] ---
    smooth_sum = jnp.sum(jnp.where(row_ok, c * lse - sum_x, 0.0))

    # --- NLL term: gather x[i, t_i] via a single fused iota-compare-select ---
    col = jax.lax.broadcasted_iota(jnp.int32, (tn, c), 1)
    picked = jnp.sum(jnp.where(col == t, x, 0.0), axis=-1, keepdims=True)
    valid = (t != ignore_index) & row_ok                             # (TILE_N, 1)
    nll_sum = jnp.sum(jnp.where(valid, lse - picked, 0.0))
    n_valid = jnp.sum(valid.astype(jnp.float32))

    # Lane-dense partial-sum slab (avoids masked 1-lane vst.msk writeback).
    lane = jax.lax.broadcasted_iota(jnp.int32, (1, 128), 1)
    out_ref[...] = jnp.where(lane == 0, smooth_sum,
                   jnp.where(lane == 1, nll_sum,
                   jnp.where(lane == 2, n_valid, 0.0)))


def label_smoothing_cross_entropy(output, target, eps=0.1, ignore_index=-100):
    """output: (N, C) float logits; target: (N,) int class indices.

    Returns a scalar float32 loss (reduction='mean')."""
    n, c = output.shape
    itemsize = jnp.dtype(output.dtype).itemsize

    # Tile sizing: 8 MiB per input buffer -> ~16 MiB double-buffered, which
    # fits comfortably inside a 32 MiB scoped VMEM budget on every TPU gen
    # (incl. v7x's 64 MiB physical VMEM) while amortizing per-step overhead.
    per_buf_budget = 8 * 1024 * 1024
    tile_n = min(n, max(1, per_buf_budget // (c * itemsize)))
    tile_n = max(8, (tile_n // 8) * 8)          # sublane-aligned
    num_tiles = pl.cdiv(n, tile_n)
    # TODO(synk): for very large C (>64k vocab) add a second grid axis over C
    # with an online (flash-style) logsumexp; single lane-pass over C here.

    t2d = target.astype(jnp.int32).reshape(n, 1)
    kernel = functools.partial(
        _ls_ce_kernel, ignore_index=ignore_index, n_rows=n)

    partials = pl.pallas_call(
        kernel,
        out_shape=jax.ShapeDtypeStruct((num_tiles, 128), jnp.float32),
        grid=(num_tiles,),
        in_specs=[
            pl.BlockSpec((tile_n, c), lambda i: (i, 0)),   # logits row tile
            pl.BlockSpec((tile_n, 1), lambda i: (i, 0)),   # matching targets
        ],
        out_specs=pl.BlockSpec((1, 128), lambda i: (i, 0)),
        compiler_params=pltpu.CompilerParams(
            dimension_semantics=("parallel",),             # megacore-shardable
            vmem_limit_bytes=32 * 1024 * 1024,
        ),
        cost_estimate=pl.CostEstimate(
            flops=6 * n * c,
            transcendentals=n * c,
            bytes_accessed=n * c * itemsize + n * 4 + num_tiles * 128 * 4,
        ),
    )(output, t2d)

    # Tiny final combine in plain JAX (per-tile partials -> scalar loss).
    totals = jnp.sum(partials, axis=0)                     # (128,)
    smooth_sum, nll_sum, n_valid = totals[0], totals[1], totals[2]
    smooth_loss = smooth_sum / n                           # mean over ALL rows
    nll = jnp.where(n_valid > 0, nll_sum / jnp.maximum(n_valid, 1.0), 0.0)
    return (1.0 - eps) * nll + eps * (smooth_loss / c)


def _reference(output, target, eps=0.1, ignore_index=-100):
    # Pure-JAX reference mirroring the PyTorch module.
    c = output.shape[-1]
    log_preds = jax.nn.log_softmax(output.astype(jnp.float32), axis=-1)
    loss = jnp.mean(-jnp.sum(log_preds, axis=-1))
    valid = target != ignore_index
    picked = jnp.take_along_axis(
        log_preds, jnp.clip(target, 0)[:, None], axis=-1)[:, 0]
    nll = jnp.sum(jnp.where(valid, -picked, 0.0)) / jnp.sum(valid.astype(jnp.float32))
    return (1.0 - eps) * nll + eps * (loss / c)


if __name__ == "__main__":
    key = jax.random.PRNGKey(0)
    k_logits, k_tgt = jax.random.split(key)

    N, C = 8, 32  # seq=8 samples, hidden=32 classes
    logits = jax.random.normal(k_logits, (N, C), dtype=jnp.float32)
    target = jax.random.randint(k_tgt, (N,), 0, C, dtype=jnp.int32)
    # exercise ignore_index on one row
    target = target.at[3].set(-100)

    got = jax.block_until_ready(label_smoothing_cross_entropy(logits, target))
    want = jax.block_until_ready(_reference(logits, target))

    assert jnp.allclose(got, want, rtol=1e-5, atol=1e-5), (got, want)
    print("KERNEL_OK")
</pallas_src>

<mosaic_0001>
module attributes {stable_mosaic.version = 11 : i64} {
  func.func @_ls_ce_kernel(%arg0: i32, %arg1: memref<8x32xf32, #tpu.memory_space<vmem>>, %arg2: memref<8x1xi32, #tpu.memory_space<vmem>>, %arg3: memref<1x128xf32, #tpu.memory_space<vmem>>) attributes {dimension_semantics = [#tpu.dimension_semantics<parallel>], iteration_bounds = array<i64: 1>, scalar_prefetch = 0 : i64, scratch_operands = 0 : i64, tpu.core_type = #tpu.core_type<tc>, window_params = [{transform_indices = @transform_0, window_bounds = array<i64: 8, 32>}, {transform_indices = @transform_1, window_bounds = array<i64: 8, 1>}, {transform_indices = @transform_2, window_bounds = array<i64: 1, 128>}]} {
    %c0 = arith.constant 0 : index
    %c0_0 = arith.constant 0 : index
    %0 = vector.load %arg1[%c0, %c0_0] : memref<8x32xf32, #tpu.memory_space<vmem>>, vector<8x32xf32>
    %c0_1 = arith.constant 0 : index
    %c0_2 = arith.constant 0 : index
    %1 = vector.load %arg2[%c0_1, %c0_2] : memref<8x1xi32, #tpu.memory_space<vmem>>, vector<8x1xi32>
    %2 = tpu.iota {dimensions = array<i32: 0>} : vector<8x1xi32>
    %c8_i32 = arith.constant 8 : i32
    %3 = arith.muli %arg0, %c8_i32 : i32
    %4 = vector.broadcast %3 : i32 to vector<8x1xi32>
    %5 = arith.addi %2, %4 : vector<8x1xi32>
    %c8_i32_3 = arith.constant 8 : i32
    %6 = vector.broadcast %c8_i32_3 : i32 to vector<8x1xi32>
    %7 = arith.cmpi slt, %5, %6 : vector<8x1xi32>
    %cst = arith.constant dense<0xFF800000> : vector<8xf32>
    %8 = vector.multi_reduction <maximumf>, %0, %cst [1] : vector<8x32xf32> to vector<8xf32>
    %9 = vector.shape_cast %8 : vector<8xf32> to vector<8x1xf32>
    %10 = vector.broadcast %9 : vector<8x1xf32> to vector<8x32xf32>
    %11 = arith.subf %0, %10 : vector<8x32xf32>
    %12 = math.exp %11 : vector<8x32xf32>
    %cst_4 = arith.constant dense<0.000000e+00> : vector<8xf32>
    %13 = vector.multi_reduction <add>, %12, %cst_4 [1] : vector<8x32xf32> to vector<8xf32>
    %14 = vector.shape_cast %13 : vector<8xf32> to vector<8x1xf32>
    %15 = math.log %14 : vector<8x1xf32>
    %16 = arith.addf %9, %15 : vector<8x1xf32>
    %cst_5 = arith.constant dense<0.000000e+00> : vector<8xf32>
    %17 = vector.multi_reduction <add>, %0, %cst_5 [1] : vector<8x32xf32> to vector<8xf32>
    %18 = vector.shape_cast %17 : vector<8xf32> to vector<8x1xf32>
    %cst_6 = arith.constant 3.200000e+01 : f32
    %19 = vector.broadcast %cst_6 : f32 to vector<8x1xf32>
    %20 = arith.mulf %19, %16 : vector<8x1xf32>
    %21 = arith.subf %20, %18 : vector<8x1xf32>
    %cst_7 = arith.constant 0.000000e+00 : f32
    %22 = vector.broadcast %cst_7 : f32 to vector<8x1xf32>
    %23 = arith.select %7, %21, %22 : vector<8x1xi1>, vector<8x1xf32>
    %24 = vector.shape_cast %23 : vector<8x1xf32> to vector<1x8x1xf32>
    %cst_8 = arith.constant dense<0.000000e+00> : vector<1xf32>
    %25 = vector.multi_reduction <add>, %24, %cst_8 [1, 2] : vector<1x8x1xf32> to vector<1xf32>
    %26 = vector.shape_cast %25 : vector<1xf32> to vector<1x1x1xf32>
    %27 = vector.extract %26[0, 0, 0] : f32 from vector<1x1x1xf32>
    %28 = tpu.iota {dimensions = array<i32: 1>} : vector<8x32xi32>
    %29 = vector.broadcast %1 : vector<8x1xi32> to vector<8x32xi32>
    %30 = arith.cmpi eq, %28, %29 : vector<8x32xi32>
    %cst_9 = arith.constant 0.000000e+00 : f32
    %31 = vector.broadcast %cst_9 : f32 to vector<8x32xf32>
    %32 = arith.select %30, %0, %31 : vector<8x32xi1>, vector<8x32xf32>
    %cst_10 = arith.constant dense<0.000000e+00> : vector<8xf32>
    %33 = vector.multi_reduction <add>, %32, %cst_10 [1] : vector<8x32xf32> to vector<8xf32>
    %34 = vector.shape_cast %33 : vector<8xf32> to vector<8x1xf32>
    %c-100_i32 = arith.constant -100 : i32
    %35 = vector.broadcast %c-100_i32 : i32 to vector<8x1xi32>
    %36 = arith.cmpi ne, %1, %35 : vector<8x1xi32>
    %37 = arith.andi %36, %7 : vector<8x1xi1>
    %38 = arith.subf %16, %34 : vector<8x1xf32>
    %cst_11 = arith.constant 0.000000e+00 : f32
    %39 = vector.broadcast %cst_11 : f32 to vector<8x1xf32>
    %40 = arith.select %37, %38, %39 : vector<8x1xi1>, vector<8x1xf32>
    %41 = vector.shape_cast %40 : vector<8x1xf32> to vector<1x8x1xf32>
    %cst_12 = arith.constant dense<0.000000e+00> : vector<1xf32>
    %42 = vector.multi_reduction <add>, %41, %cst_12 [1, 2] : vector<1x8x1xf32> to vector<1xf32>
    %43 = vector.shape_cast %42 : vector<1xf32> to vector<1x1x1xf32>
    %44 = vector.extract %43[0, 0, 0] : f32 from vector<1x1x1xf32>
    %45 = arith.extui %37 : vector<8x1xi1> to vector<8x1xi32>
    %46 = arith.sitofp %45 : vector<8x1xi32> to vector<8x1xf32>
    %47 = vector.shape_cast %46 : vector<8x1xf32> to vector<1x8x1xf32>
    %cst_13 = arith.constant dense<0.000000e+00> : vector<1xf32>
    %48 = vector.multi_reduction <add>, %47, %cst_13 [1, 2] : vector<1x8x1xf32> to vector<1xf32>
    %49 = vector.shape_cast %48 : vector<1xf32> to vector<1x1x1xf32>
    %50 = vector.extract %49[0, 0, 0] : f32 from vector<1x1x1xf32>
    %51 = tpu.iota {dimensions = array<i32: 1>} : vector<1x128xi32>
    %c0_i32 = arith.constant 0 : i32
    %52 = vector.broadcast %c0_i32 : i32 to vector<1x128xi32>
    %53 = arith.cmpi eq, %51, %52 : vector<1x128xi32>
    %c1_i32 = arith.constant 1 : i32
    %54 = vector.broadcast %c1_i32 : i32 to vector<1x128xi32>
    %55 = arith.cmpi eq, %51, %54 : vector<1x128xi32>
    %c2_i32 = arith.constant 2 : i32
    %56 = vector.broadcast %c2_i32 : i32 to vector<1x128xi32>
    %57 = arith.cmpi eq, %51, %56 : vector<1x128xi32>
    %cst_14 = arith.constant 0.000000e+00 : f32
    %58 = vector.broadcast %50 : f32 to vector<1x128xf32>
    %59 = vector.broadcast %cst_14 : f32 to vector<1x128xf32>
    %60 = arith.select %57, %58, %59 : vector<1x128xi1>, vector<1x128xf32>
    %61 = vector.broadcast %44 : f32 to vector<1x128xf32>
    %62 = arith.select %55, %61, %60 : vector<1x128xi1>, vector<1x128xf32>
    %63 = vector.broadcast %27 : f32 to vector<1x128xf32>
    %64 = arith.select %53, %63, %62 : vector<1x128xi1>, vector<1x128xf32>
    %c0_15 = arith.constant 0 : index
    %c0_16 = arith.constant 0 : index
    %65 = vector.load %arg3[%c0_15, %c0_16] : memref<1x128xf32, #tpu.memory_space<vmem>>, vector<1x128xf32>
    tpu.vector_store %arg3[%c0_15, %c0_16], %64 {strides = array<i32>} : memref<1x128xf32, #tpu.memory_space<vmem>>, vector<1x128xf32>,
    return
  }
  func.func @transform_0(%arg0: i32) -> (i32, i32) {
    %c0_i32 = arith.constant 0 : i32
    %c0_i32_0 = arith.constant 0 : i32
    return %arg0, %c0_i32 : i32, i32
  }
  func.func @transform_1(%arg0: i32) -> (i32, i32) {
    %c0_i32 = arith.constant 0 : i32
    %c0_i32_0 = arith.constant 0 : i32
    return %arg0, %c0_i32 : i32, i32
  }
  func.func @transform_2(%arg0: i32) -> (i32, i32) {
    %c0_i32 = arith.constant 0 : i32
    %c0_i32_0 = arith.constant 0 : i32
    return %arg0, %c0_i32 : i32, i32
  }
}

</mosaic_0001>

<bundles_post_ra>
// kernel: tpu_custom_call.1
= control target key start
LH: loop header
LB: loop body
LE: loop exit
PB: predicated region body
PF: predicated region fallthrough
CT: control target
= control target key end

     0   :  { %vm20_vm0 = vcmask 261120   ;;  %s190_s0 = inlined_call_operand.vmem [shape: f32[8,32], index: 0, kind: input, shape index: {}]   ;;  %s191_s1 = inlined_call_operand.vmem [shape: s32[8,1], index: 1, kind: input, shape index: {}]   ;;  %s192_s2 = inlined_call_operand.hbm [shape: f32[1,128], index: 2, kind: output, shape index: {}]  }
   0x1   :  { %v12_v0 = vld [vmem:[%s190_s0] sm:$0xff] }
   0x2   :  { %7 = vsyncpa [#allocation3], 0  ;;  %v21_v1 = vsel %vm20_vm0, %v12_v0, -inf  ;;  %v153_v2 = vmov 0   ;;  %v13_v3 = vld [vmem:[%s191_s1] sm:$0xff]  ;;  %v33_v4 = vsel %vm20_vm0, %v12_v0, 0.0  ;;  %v50_v10 = vlaneseq }
   0x3   :  { %122 = vset.pattern.permute.xlu0 %v153_v2  ;;  %34 = vadd.xlane.f32.xlu2 %v33_v4  ;;  %vm60_vm2 = vcmp.ne.s32.totalorder %v13_v3, 4294967196  ;;  %vm39_vm3 = vcmask 7168   ;;  %v154_v27 = vmov 0.0   ;;  %s155_s13 = smov [#allocation2]   ;;  %s103_s18 = sshll.u32 %s192_s2, 4  ;;  %s104_s18 = int_to_ptr.hbm [resolvable:$true] %s103_s18 }
   0x4   :  { %22 = vmax.xlane.f32.xlu0 %v21_v1  ;;  %v180_v11 = vand.u32 127, %v50_v10  ;;  %v112_v28 = vsel %vm60_vm2, 1.0, %v154_v27  ;;  %s101_s14 = sshll.u32 %s155_s13, 4  ;;  %s102_s14 = int_to_ptr.vmem [resolvable:$true] %s101_s14 }
   0x5   :  { %v76_v29 = vsel %vm39_vm3, %v112_v28, 0.0 }
   0x6   :  { %vm88_vm4 = vcmp.eq.s32.totalorder %v180_v11, 2  ;;  %vm87_vm5 = vcmp.eq.s32.totalorder %v180_v11, 1  ;;  %vm86_vm6 = vcmp.eq.s32.totalorder %v180_v11, 0 }
  0x18   :  { %53 = vperm.xlu0 %122, %v13_v3  }
  0x76   :  { %v35_v20 = vpop.xlane.xlu2 %34 }
  0x77   :  { %v23_v5 = vpop.xlane.xlu0 %22 }
  0x78   :  { %v24_v6 = vsub.f32 %v12_v0, %v23_v5 }
  0x7a   :  { %v25_v7 = vmul.f32 1.442695, %v24_v6 }
  0x7c   :  { %123 = vpow2.f32 %v25_v7 }
  0x82   :  { %v124_v8 = vpop.eup %123 }
  0x83   :  { %v27_v9 = vsel %vm20_vm0, %v124_v8, 0.0 }
  0x84   :  { %28 = vadd.xlane.f32.xlu1 %v27_v9 }
  0x8a   :  { %v54_v12 = vpop.permute.xlu0 %53 }
  0x8b   :  { %vm55_vm1 = vcmp.eq.s32.totalorder %v180_v11, %v54_v12 }
  0x8c   :  { %v56_v13 = vsel %vm55_vm1, %v12_v0, 0.0 }
  0x8d   :  { %v57_v14 = vsel %vm20_vm0, %v56_v13, 0.0 }
  0x8e   :  { %58 = vadd.xlane.f32.xlu1 %v57_v14 }
  0xf7   :  { %v29_v15 = vpop.xlane.xlu1 %28 }
  0xf8   :  { %125 = vlog2.f32 %v29_v15 }
  0xfe   :  { %v126_v16 = vpop.eup %125 }
  0xff   :  { %v31_v17 = vmul.f32 0.6931472, %v126_v16 }
 0x101   :  { %v32_v18 = vadd.f32 %v31_v17, %v23_v5  ;;  %v59_v19 = vpop.xlane.xlu1 %58 }
 0x103   :  { %v62_v21 = vsub.f32 %v32_v18, %v59_v19  ;;  %v36_v22 = vmul.f32 32.0, %v32_v18 }
 0x105   :  { %v37_v23 = vsub.f32 %v36_v22, %v35_v20  ;;  %v63_v24 = vsel %vm60_vm2, %v62_v21, 0.0 }
 0x106   :  { %v64_v25 = vsel %vm39_vm3, %v63_v24, 0.0 }
 0x107   :  { %65 = vadd.xlane.f32.xlu1 %v64_v25  ;;  %v40_v26 = vsel %vm39_vm3, %v37_v23, 0.0 }
 0x108   :  { %41 = vadd.xlane.f32.xlu2 %v40_v26 }
 0x110   :  { %77 = vadd.xlane.f32.xlu2 %v76_v29 }
 0x17a   :  { %v66_v30 = vpop.xlane.xlu1 %65 }
 0x17b   :  { %v67_v31 = vrot.slane %v66_v30, 4  ;;  %v42_v32 = vpop.xlane.xlu2 %41 }
 0x17c   :  { %v43_v33 = vrot.slane %v42_v32, 4 }
 0x17d   :  { %v68_v34 = vadd.f32 %v67_v31, %v66_v30 }
 0x17e   :  { %v44_v35 = vadd.f32 %v43_v33, %v42_v32 }
 0x17f   :  { %v69_v36 = vrot.slane %v68_v34, 2 }
 0x180   :  { %v45_v37 = vrot.slane %v44_v35, 2 }
 0x181   :  { %v70_v38 = vadd.f32 %v69_v36, %v68_v34 }
 0x182   :  { %v46_v39 = vadd.f32 %v45_v37, %v44_v35 }
 0x183   :  { %v78_v40 = vpop.xlane.xlu2 %77  ;;  %v71_v41 = vrot.slane %v70_v38, 1 }
 0x184   :  { %v79_v42 = vrot.slane %v78_v40, 4  ;;  %v47_v43 = vrot.slane %v46_v39, 1 }
 0x185   :  { %v72_v44 = vadd.f32 %v71_v41, %v70_v38 }
 0x186   :  { %v80_v45 = vadd.f32 %v79_v42, %v78_v40  ;;  %v48_v46 = vadd.f32 %v47_v43, %v46_v39 }
 0x188   :  { %v81_v47 = vrot.slane %v80_v45, 2  ;;  %113 = vpush %v48_v46 }
 0x189   :  { %115 = vpush %v72_v44 }
 0x18a   :  { %v82_v48 = vadd.f32 %v81_v47, %v80_v45 }
 0x18c   :  { %v83_v49 = vrot.slane %v82_v48, 1 }
 0x18e   :  { %v84_v50 = vadd.f32 %v83_v49, %v82_v48 }
 0x190   :  { %117 = vpush %v84_v50 }
 0x1b9   :  { %s114_s0 = spop %113 }
 0x1ba   :  { %s116_s1 = spop %115  ;;  %v93_v54 = vstv %s114_s0 }
 0x1bb   :  { %v91_v52 = vstv %s116_s1 }
 0x1c1   :  { %s118_s15 = spop %117 }
 0x1c2   :  { %v89_v51 = vstv %s118_s15 }
 0x1c3   :  { %v90_v53 = vsel %vm88_vm4, %v89_v51, 0.0 }
 0x1c4   :  { %v92_v55 = vsel %vm87_vm5, %v91_v52, %v90_v53 }
 0x1c5   :  { %v94_v56 = vsel %vm86_vm6, %v93_v54, %v92_v55 }
 0x1c6   :  { %95 = vst [vmem:[#allocation2] sm:$0x1] %v94_v56 }
 0x1c7   :  { %106 = dma.vmem_to_hbm [thread:$0]  %s102_s14, 16, %s104_s18, [#allocation3]  }
 0x1c8   :  { %151 = dma.done.wait [#allocation3], 16  }
 0x1c9   :  { %152 = vsyncadd [#allocation3], 4294967280 }
 0x1ca   :  { %111 = vsyncpa [#allocation3], 1 }

</bundles_post_ra>
